<compile_context>
chip_gen: v7x
topology: tpu7x:2x2x1
jax: 0.10.0
libtpu: 0.0.40
codegen_flags: <defaults>
</compile_context>

<pallas_src>
import functools

import jax
import jax.numpy as jnp
from jax.experimental import pallas as pl
from jax.experimental.pallas import tpu as pltpu


def _round_up(x: int, m: int) -> int:
    return ((x + m - 1) // m) * m


def _sublane_align(dtype) -> int:
    # Minimum second-to-last block dim per dtype packing (f32:8, bf16:16, i8:32).
    return {4: 8, 2: 16, 1: 32}[jnp.dtype(dtype).itemsize]


def _pick_tile(dim_p: int, target: int, align: int):
    """dim_p is a multiple of `align`.  Return (tile, padded_dim) with tile a
    multiple of `align`; prefers exact divisors of dim_p (no extra padding)
    and falls back to padding only for pathological sizes."""
    if dim_p <= target:
        return dim_p, dim_p
    t = (target // align) * align
    best = align
    while t >= align:
        if dim_p % t == 0:
            best = t
            break
        t -= align
    if best * 4 >= target:
        return best, dim_p
    # Pathological (e.g. large-prime multiples): pad up to a tile multiple.
    return target, _round_up(dim_p, target)


def _split_in_two(dim_p: int, align: int):
    """Largest multiple of `align` dividing dim_p that yields >=2 blocks."""
    if dim_p < 2 * align:
        return None
    t = ((dim_p // 2) // align) * align
    while t >= align:
        if dim_p % t == 0:
            return t
        t -= align
    return align


def _linear_kernel_accum_out(x_ref, w_ref, o_ref):
    # f32 output: accumulate directly into the K-resident output block.
    prod = jnp.dot(x_ref[...].astype(w_ref.dtype), w_ref[...],
                   preferred_element_type=jnp.float32)

    @pl.when(pl.program_id(2) == 0)
    def _():
        o_ref[...] = prod

    @pl.when(pl.program_id(2) != 0)
    def _():
        o_ref[...] += prod


def _linear_kernel_scratch_acc(x_ref, w_ref, o_ref, acc_ref):
    # Lower-precision output: keep an f32 scratch accumulator across K steps.
    prod = jnp.dot(x_ref[...].astype(w_ref.dtype), w_ref[...],
                   preferred_element_type=jnp.float32)

    @pl.when(pl.program_id(2) == 0)
    def _():
        acc_ref[...] = prod

    @pl.when(pl.program_id(2) != 0)
    def _():
        acc_ref[...] += prod

    @pl.when(pl.program_id(2) == pl.num_programs(2) - 1)
    def _():
        o_ref[...] = acc_ref[...].astype(o_ref.dtype)


@functools.partial(jax.jit, static_argnames=("tm", "tn", "tk", "compute_dtype"))
def linear_bmm(x, weight, *, tm=512, tn=512, tk=1024, compute_dtype=jnp.bfloat16):
    """out[b] = x[b] @ weight.T   (x: [B, M, K], weight: [N, K]) -> [B, M, N]."""
    B, M, K = x.shape
    N, K_w = weight.shape
    assert K == K_w, "in_features mismatch"

    out_dtype = x.dtype
    cdt = jnp.dtype(compute_dtype)
    cbytes = cdt.itemsize
    obytes = jnp.dtype(out_dtype).itemsize

    BM = B * M
    K_p = _round_up(K, 128)
    N_p = _round_up(N, 128)

    # --- K / N tiling: keep the whole weight VMEM-resident when small -------
    weight_resident = (K_p <= 4096 and N_p <= 2048
                       and 2 * K_p * N_p * cbytes <= (8 << 20))
    if weight_resident:
        tk_e, K_pad = K_p, K_p
        tn_e, N_pad = N_p, N_p
    else:
        tk_e, K_pad = _pick_tile(K_p, max(tk, 128), 128)
        tn_e, N_pad = _pick_tile(N_p, max(tn, 128), 128)

    # --- activation storage dtype: wrapper-cast only if re-read enough ------
    x_reuse = N_pad // tn_e
    cast_x_in_wrapper = (cdt != x.dtype) and (x_reuse >= 4)
    x_store_dtype = cdt if cast_x_in_wrapper else x.dtype

    # --- row (BM) tiling: pad only to the dtype minimum ----------------------
    row_align = max(_sublane_align(x_store_dtype), _sublane_align(out_dtype))
    BM_p = _round_up(BM, row_align)
    tm_e, BM_pad = _pick_tile(BM_p, max(tm, row_align), row_align)

    # v7x megacore: make sure a "parallel" axis has >=2 blocks; split rows
    # first so the weight block stays resident.
    if BM_pad // tm_e == 1 and N_pad // tn_e == 1:
        s = _split_in_two(BM_pad, row_align)
        if s is not None:
            tm_e = s
        else:
            s = _split_in_two(N_pad, 128)
            if s is not None:
                tn_e = s

    # --- prepare operands (pads are exact for a matmul) ----------------------
    x2 = x.reshape(BM, K)
    if cast_x_in_wrapper:
        x2 = x2.astype(cdt)
    if (BM_pad, K_pad) != (BM, K):
        x2 = jnp.pad(x2, ((0, BM_pad - BM), (0, K_pad - K)))

    # One-time (N,K) -> (K,N) transpose + cast so the kernel's contraction is
    # MXU-native (no per-tile transpose); fused by XLA into a single pass.
    w = weight.astype(cdt).T
    if (K_pad, N_pad) != (K, N):
        w = jnp.pad(w, ((0, K_pad - K), (0, N_pad - N)))

    grid = (BM_pad // tm_e, N_pad // tn_e, K_pad // tk_e)

    accumulate_in_out = out_dtype == jnp.float32
    kernel = _linear_kernel_accum_out if accumulate_in_out else _linear_kernel_scratch_acc
    scratch = [] if accumulate_in_out else [pltpu.VMEM((tm_e, tn_e), jnp.float32)]

    xbytes = jnp.dtype(x_store_dtype).itemsize
    footprint = (2 * tm_e * tk_e * xbytes          # x, double-buffered
                 + 2 * tk_e * tn_e * cbytes        # w, double-buffered
                 + 2 * tm_e * tn_e * obytes        # out, double-buffered
                 + (0 if accumulate_in_out else tm_e * tn_e * 4))
    vmem_limit = footprint + (8 << 20)
    vmem_limit = max(vmem_limit, 16 << 20)
    vmem_limit = min(vmem_limit, 48 << 20)                 # v7x has 64 MiB
    vmem_limit = int(max(vmem_limit, footprint + (2 << 20)))

    out_p = pl.pallas_call(
        kernel,
        out_shape=jax.ShapeDtypeStruct((BM_pad, N_pad), out_dtype),
        grid_spec=pltpu.PrefetchScalarGridSpec(
            num_scalar_prefetch=0,
            grid=grid,
            in_specs=[
                pl.BlockSpec((tm_e, tk_e), lambda i, j, k: (i, k)),
                pl.BlockSpec((tk_e, tn_e), lambda i, j, k: (k, j)),
            ],
            out_specs=pl.BlockSpec((tm_e, tn_e), lambda i, j, k: (i, j)),
            scratch_shapes=scratch,
        ),
        compiler_params=pltpu.CompilerParams(
            dimension_semantics=("parallel", "parallel", "arbitrary"),
            vmem_limit_bytes=vmem_limit,
        ),
    )(x2, w)

    return out_p[:BM, :N].reshape(B, M, N)


if __name__ == "__main__":
    # Small shapes consistent with the forward: input [B, M, in], weight [out, in]
    B, M, IN, OUT = 2, 8, 32, 16
    key = jax.random.PRNGKey(0)
    kx, kw = jax.random.split(key)
    x = jax.random.normal(kx, (B, M, IN), dtype=jnp.float32)
    weight = jax.random.normal(kw, (OUT, IN), dtype=jnp.float32) * 0.1

    # Default path: bf16 operands on the MXU, f32 accumulation.
    out = jax.block_until_ready(linear_bmm(x, weight))
    assert out.shape == (B, M, OUT), out.shape
    ref_bf16 = jnp.einsum("bmk,nk->bmn",
                          x.astype(jnp.bfloat16), weight.astype(jnp.bfloat16),
                          preferred_element_type=jnp.float32)
    assert jnp.allclose(out, ref_bf16, atol=1e-3, rtol=1e-3)
    ref_f32 = jnp.einsum("bmk,nk->bmn", x, weight,
                         precision=jax.lax.Precision.HIGHEST)
    assert jnp.allclose(out, ref_f32, atol=3e-2, rtol=3e-2)

    # Exact-precision path (compute_dtype=f32) still available.
    out_f32 = jax.block_until_ready(
        linear_bmm(x, weight, compute_dtype=jnp.float32))
    assert jnp.allclose(out_f32, ref_f32, atol=5e-3, rtol=5e-3)

    # Larger, non-divisible shapes exercising real tiling (no over-padding:
    # BM=600, K=640, N=384 need no activation pad and no wasted FLOPs).
    B2, M2, IN2, OUT2 = 3, 200, 640, 384
    kx2, kw2 = jax.random.split(jax.random.PRNGKey(1))
    x2 = jax.random.normal(kx2, (B2, M2, IN2), dtype=jnp.float32)
    w2 = jax.random.normal(kw2, (OUT2, IN2), dtype=jnp.float32) * 0.02
    out2 = jax.block_until_ready(linear_bmm(x2, w2))
    ref2 = jnp.einsum("bmk,nk->bmn",
                      x2.astype(jnp.bfloat16), w2.astype(jnp.bfloat16),
                      preferred_element_type=jnp.float32)
    assert out2.shape == (B2, M2, OUT2)
    assert jnp.allclose(out2, ref2, atol=2e-3, rtol=2e-3)

    print("KERNEL_OK")
</pallas_src>

<mosaic_0001>
module attributes {stable_mosaic.version = 11 : i64} {
  func.func @_linear_kernel_accum_out(%arg0: i32, %arg1: i32, %arg2: i32, %arg3: memref<8x128xf32, #tpu.memory_space<vmem>>, %arg4: memref<128x128xbf16, #tpu.memory_space<vmem>>, %arg5: memref<8x128xf32, #tpu.memory_space<vmem>>) attributes {dimension_semantics = [#tpu.dimension_semantics<parallel>, #tpu.dimension_semantics<parallel>, #tpu.dimension_semantics<arbitrary>], iteration_bounds = array<i64: 2, 1, 1>, scalar_prefetch = 0 : i64, scratch_operands = 0 : i64, tpu.core_type = #tpu.core_type<tc>, window_params = [{transform_indices = @transform_0, window_bounds = array<i64: 8, 128>}, {transform_indices = @transform_1, window_bounds = array<i64: 128, 128>}, {transform_indices = @transform_2, window_bounds = array<i64: 8, 128>}]} {
    %c0 = arith.constant 0 : index
    %c0_0 = arith.constant 0 : index
    %0 = vector.load %arg3[%c0, %c0_0] : memref<8x128xf32, #tpu.memory_space<vmem>>, vector<8x128xf32>
    %1 = arith.truncf %0 : vector<8x128xf32> to vector<8x128xbf16>
    %c0_1 = arith.constant 0 : index
    %c0_2 = arith.constant 0 : index
    %2 = vector.load %arg4[%c0_1, %c0_2] : memref<128x128xbf16, #tpu.memory_space<vmem>>, vector<128x128xbf16>
    %cst = arith.constant dense<0.000000e+00> : vector<8x128xf32>
    %3 = tpu.matmul %1, %2, %cst {dimension_numbers = #tpu.dot_dimension_numbers<[1], [0], [0], [1], [0, 0, 1, 1], [], []>} : vector<8x128xbf16>, vector<128x128xbf16>, vector<8x128xf32> -> vector<8x128xf32>
    %c0_i32 = arith.constant 0 : i32
    %4 = arith.cmpi eq, %arg2, %c0_i32 : i32
    %5 = arith.extui %4 : i1 to i32
    %c0_i32_3 = arith.constant 0 : i32
    %6 = arith.cmpi ne, %5, %c0_i32_3 : i32
    scf.if %6 {
      %c0_6 = arith.constant 0 : index
      %c0_7 = arith.constant 0 : index
      %10 = vector.load %arg5[%c0_6, %c0_7] : memref<8x128xf32, #tpu.memory_space<vmem>>, vector<8x128xf32>
      tpu.vector_store %arg5[%c0_6, %c0_7], %3 {strides = array<i32>} : memref<8x128xf32, #tpu.memory_space<vmem>>, vector<8x128xf32>,
    } else {
    }
    %c0_i32_4 = arith.constant 0 : i32
    %7 = arith.cmpi ne, %arg2, %c0_i32_4 : i32
    %8 = arith.extui %7 : i1 to i32
    %c0_i32_5 = arith.constant 0 : i32
    %9 = arith.cmpi ne, %8, %c0_i32_5 : i32
    scf.if %9 {
      %c0_6 = arith.constant 0 : index
      %c0_7 = arith.constant 0 : index
      %10 = vector.load %arg5[%c0_6, %c0_7] : memref<8x128xf32, #tpu.memory_space<vmem>>, vector<8x128xf32>
      %11 = arith.addf %10, %3 : vector<8x128xf32>
      %c0_8 = arith.constant 0 : index
      %c0_9 = arith.constant 0 : index
      %12 = vector.load %arg5[%c0_8, %c0_9] : memref<8x128xf32, #tpu.memory_space<vmem>>, vector<8x128xf32>
      tpu.vector_store %arg5[%c0_8, %c0_9], %11 {strides = array<i32>} : memref<8x128xf32, #tpu.memory_space<vmem>>, vector<8x128xf32>,
    } else {
    }
    return
  }
  func.func @transform_0(%arg0: i32, %arg1: i32, %arg2: i32) -> (i32, i32) {
    %c0_i32 = arith.constant 0 : i32
    return %arg0, %arg2 : i32, i32
  }
  func.func @transform_1(%arg0: i32, %arg1: i32, %arg2: i32) -> (i32, i32) {
    %c0_i32 = arith.constant 0 : i32
    return %arg2, %arg1 : i32, i32
  }
  func.func @transform_2(%arg0: i32, %arg1: i32, %arg2: i32) -> (i32, i32) {
    %c0_i32 = arith.constant 0 : i32
    return %arg0, %arg1 : i32, i32
  }
}

</mosaic_0001>

<bundles_post_ra>
// kernel: linear_bmm.1
= control target key start
LH: loop header
LB: loop body
LE: loop exit
PB: predicated region body
PF: predicated region fallthrough
CT: control target
= control target key end

     0   :  { %s547_s9 = smov 0   ;;  %s549_s10 = smov 0   ;;  %s604_s0 = inlined_call_operand.vmem [shape: f32[16,128], index: 0, kind: input, shape index: {}]   ;;  %s605_s1 = inlined_call_operand.vmem [shape: bf16[128,128], index: 1, kind: input, shape index: {}]   ;;  %s606_s2 = inlined_call_operand.vmem [shape: f32[16,128], index: 2, kind: output, shape index: {}]  }
   0x1   :  { %s551_s11 = smov 0  }
   0x2 LB: > { %s31_s12 = sadd.s32 1, %s524_s10  ;;  %p430_p0 = scmp.ge.s32.totalorder %s528_s11, 1  ;;  %s528_s11 = sphi %s551_s11, %s12_s11   ;;  %s524_s10 = sphi %s549_s10, %s608_s10   ;;  %s520_s9 = sphi %s547_s9, %s607_s9  }
   0x3   : > { %p33_p1 = scmp.ge.s32.totalorder %s31_s12, 2  ;;  %p153_p2 = scmp.lt.s32.totalorder %s528_s11, 3 }
   0x5   : > { %s610_s12 = smov (%p33_p1, %s31_s12), 0  ;;  %p154_p3 = pnand %p430_p0, %p153_p2 }
   0x6   : > { %v498_v0 = vld [vmem:[%s605_s1] sm:$0xff] (!%p154_p3)   ;;  %v530_v1 = vmov (!%p154_p3), 0.0   ;;  %v499_v2 = vld [vmem:[%s605_s1 + $0x8] sm:$0xff] (!%p154_p3)   ;;  %vm531_vm0 = vmmov (!%p154_p3), 0   ;;  %v500_v3 = vld [vmem:[%s605_s1 + $0x10] sm:$0xff] (!%p154_p3)   ;;  %p187_p4 = scmp.lt.s32.totalorder (!%p154_p3), %s520_s9, 1 }
   0x7   : > { %157 = sbr.rel (%p154_p3) target bundleno = 254 (0xfe), region = 28  ;;  %452 = vmatprep.subr.bf16.mxu0 (!%p154_p3), %v530_v1  ;;  %468 = vmatprep.mubr.msk.bf16.mxu0 (!%p154_p3), %vm531_vm0, %v530_v1  ;;  %v501_v4 = vld [vmem:[%s605_s1 + $0x18] sm:$0xff] (!%p154_p3)   ;;  %v502_v5 = vld [vmem:[%s605_s1 + $0x20] sm:$0xff] (!%p154_p3)   ;;  %v503_v6 = vld [vmem:[%s605_s1 + $0x28] sm:$0xff] (!%p154_p3)  }
   0x8   : > { %453 = vmatpush3.bf16.msra.mxu0 (!%p154_p3), %v498_v0  ;;  %v504_v7 = vld [vmem:[%s605_s1 + $0x30] sm:$0xff] (!%p154_p3)   ;;  %v505_v8 = vld [vmem:[%s605_s1 + $0x38] sm:$0xff] (!%p154_p3)  }
   0x9   : > { %454 = vmatprep.subr.bf16.mxu0 (!%p154_p3), %v530_v1 }
   0xc   : > { %455 = vmatpush3.bf16.msra.mxu0 (!%p154_p3), %v499_v2 }
   0xd   : > { %456 = vmatprep.subr.bf16.mxu0 (!%p154_p3), %v530_v1 }
   0xe   : > { %s612_s9 = smov (!%p187_p4, %s520_s9), 1 }
   0xf   : > { %s431_s25 = sshll.u32 %s612_s9, 3 }
  0x10   : > { %457 = vmatpush3.bf16.msra.mxu0 %v500_v3  ;;  %s193_s30 = scalar_lea.vmem %s604_s0, %s431_s25  ;;  %s209_s7 = scalar_lea.vmem %s606_s2, %s431_s25 }
  0x11   : > { %458 = vmatprep.subr.bf16.mxu0 %v530_v1  ;;  %v211_v9 = vld [vmem:[%s193_s30] sm:$0xff] }
  0x12   : > { %v212_v10 = vpack.c.bf16 %v211_v9, %v211_v9 }
  0x14   : > { %459 = vmatpush3.bf16.msra.mxu0 %v501_v4 }
  0x15   : > { %460 = vmatprep.subr.bf16.mxu0 %v530_v1 }
  0x18   : > { %461 = vmatpush3.bf16.msra.mxu0 %v502_v5 }
  0x19   : > { %462 = vmatprep.subr.bf16.mxu0 %v530_v1 }
  0x1c   : > { %463 = vmatpush3.bf16.msra.mxu0 %v503_v6 }
  0x1d   : > { %464 = vmatprep.subr.bf16.mxu0 %v530_v1 }
  0x20   : > { %465 = vmatpush3.bf16.msra.mxu0 %v504_v7 }
  0x21   : > { %466 = vmatprep.subr.bf16.mxu0 %v530_v1 }
  0x24   : > { %467 = vmatpush3.bf16.msra.mxu0 %v505_v8 }
  0x27   : > { %469 = vmatmul.mubr.bf16.vlgmr.msra.gmra.mrb[0].mxu0 %v212_v10 }
  0xfa   : > { %v311_v11 = vpop.f32.mrb[0].mxu0 }
  0xfb   : > { %321 = vst [vmem:[%s209_s7] sm:$0xff] %v311_v11  ;;  %v470_v12 = vpop.f32.mrb[1].mxu0 }
  0xfc   : > { %v314_v13 = vpop.f32.mrb[2].mxu0 }
  0xfd   : > { %v471_v14 = vpop.f32.mrb[3].mxu0 }
  0xfe PF: > { %s12_s11 = sadd.s32 1, %s528_s11   ;;  %s607_s9 = smov %s524_s10 }
  0xff   : > { %p9_p5 = scmp.ge.s32.totalorder %s12_s11, 4   ;;  %s608_s10 = smov %s610_s12 }
 0x101   :  { %11 = sbr.rel (!%p9_p5) target bundleno = 2 (0x2), region = 69 }

</bundles_post_ra>
